<compile_context>
chip_gen: v5e
topology: v5e:2x2
jax: 0.10.0
libtpu: 0.0.40
codegen_flags: <defaults>
</compile_context>

<pallas_src>
import math

import jax
import jax.numpy as jnp
import numpy as np
from jax.experimental import pallas as pl
from jax.experimental.pallas import tpu as pltpu

# ----------------------------- configuration --------------------------------
BATCH = 2
INPUT_DIM = 32          # divisible by K=8 attention heads
NUM_NODES = 4
CUTS = 2
CUT_SIZE = 3
NO_PROXIES = 2
MEMORY_SIZE = 8
K_HEADS = 8
HEAD_SIZE = INPUT_DIM // K_HEADS
DYNAMIC = False

T_TOTAL = CUTS * CUT_SIZE                   # total temporal length of x
SEQ_FULL = NO_PROXIES + CUT_SIZE            # proxies + one cut (temporal length)
M_T = NO_PROXIES * NUM_NODES                # HTSA query rows   (time-major flat)
L_T = SEQ_FULL * NUM_NODES                  # HTSA key rows
M_S = NO_PROXIES * NUM_NODES                # SSA rows
SCALE = 1.0 / math.sqrt(HEAD_SIZE)
NEG_INF = -1e30
MATMUL_DTYPE = jnp.bfloat16                 # bf16 MXU operands, f32 accumulate

# slots in the packed (NUM_LIN, D, D) weight / (NUM_LIN, 1, D) bias tensors
(W_TKEY, W_TVAL, W_TP1, W_TP2,
 W_SKEY, W_SVAL, W_SP1, W_SP2,
 W_AG1, W_AG2) = range(10)
NUM_LIN = 10

_W_ORDER = ("tpg0_w", "tpg1_w", "t_proj1_w", "t_proj2_w",
            "spg0_w", "spg1_w", "s_proj1_w", "s_proj2_w",
            "agg1_w", "agg2_w")
_B_ORDER = ("tpg0_b", "tpg1_b", "t_proj1_b", "t_proj2_b",
            "spg0_b", "spg1_b", "s_proj1_b", "s_proj2_b",
            "agg1_b", "agg2_b")


# ----------------------- in-kernel building blocks ---------------------------
def _mm(a, b):
    """a @ b with bf16 operands, f32 accumulation."""
    return jax.lax.dot_general(
        a.astype(MATMUL_DTYPE), b.astype(MATMUL_DTYPE),
        (((1,), (0,)), ((), ())), preferred_element_type=jnp.float32)


def _mm_t(a, b):
    """a @ b.T with bf16 operands, f32 accumulation."""
    return jax.lax.dot_general(
        a.astype(MATMUL_DTYPE), b.astype(MATMUL_DTYPE),
        (((1,), (1,)), ((), ())), preferred_element_type=jnp.float32)


def _dense(x, w_ref, b_ref, idx, activation="none"):
    """LinearNDimension (static 2-D weights): act(x @ W + b)."""
    y = _mm(x, w_ref[idx]) + b_ref[idx]            # (M, D) f32
    if activation == "relu":
        y = jnp.maximum(y, 0.0)
    elif activation == "tanh":
        y = jnp.tanh(y)
    elif activation == "sigmoid":
        y = jax.nn.sigmoid(y)
    return y


def _head_lane_mask(h):
    """(1, D) 0/1 mask selecting the lanes of head h (heads are contiguous)."""
    lane = jax.lax.broadcasted_iota(jnp.int32, (1, INPUT_DIM), 1)
    lo = h * HEAD_SIZE
    return jnp.where((lane >= lo) & (lane < lo + HEAD_SIZE), 1.0, 0.0)


def _mha(q, k, v, add_mask):
    """Multi-head attention, lane-dense formulation.

    q:(M,D) k,v:(L,D); heads are contiguous HEAD_SIZE blocks on the lane axis.
    `add_mask` (M,L) is 0 for same-group (node / time-step) pairs and -1e30
    otherwise.  Per head: scores from lane-masked Q, softmax over valid keys,
    then P @ (V * lane_mask) writes only that head's output lanes, so summing
    over heads assembles the concatenated multi-head output directly.
    """
    out = jnp.zeros((q.shape[0], INPUT_DIM), jnp.float32)
    for h in range(K_HEADS):
        m = _head_lane_mask(h)
        s = _mm_t(q * m, k) * SCALE + add_mask                 # (M, L) f32
        s = s - jnp.max(s, axis=-1, keepdims=True)
        p = jnp.exp(s)
        p = p * pl.reciprocal(jnp.sum(p, axis=-1, keepdims=True), approx=True)
        out = out + _mm(p, v * m)                              # only head-h lanes
    return out


# ------------------------------ fused kernel ---------------------------------
def _shtblock_kernel(x_ref, prox_ref, mask_t_ref, mask_s_ref, w_ref, b_ref,
                     o_ref, tf_ref):
    """One batch element per grid step.  Cuts are a sequential carry inside."""
    N, D = NUM_NODES, INPUT_DIM
    mask_t = mask_t_ref[...]                 # (M_T, L_T) additive, same-node
    mask_s = mask_s_ref[...]                 # (M_S, M_S) additive, same-time
    out = jnp.zeros((N, D), jnp.float32)     # matches the python int 0 start

    for i in range(CUTS):
        # -- assemble t_full = [proxies_i + out ; x_cut_i] into VMEM scratch,
        #    flattened time-major to (SEQ_FULL*N, D) rows (lane-dense, D=32) --
        for p in range(NO_PROXIES):
            tf_ref[p * N:(p + 1) * N, :] = prox_ref[0, i * NO_PROXIES + p] + out
        for t in range(CUT_SIZE):
            r0 = (NO_PROXIES + t) * N
            tf_ref[r0:r0 + N, :] = x_ref[0, i * CUT_SIZE + t]
        t_full = tf_ref[...]                 # (L_T, D) f32
        q = t_full[:M_T, :]                  # proxies part = HTSA query

        # ---------------- HTSA: temporal attention per (head, node) ----------
        key = _dense(t_full, w_ref, b_ref, W_TKEY)     # LinearNDimension
        val = _dense(t_full, w_ref, b_ref, W_TVAL)
        h = _mha(q, key, val, mask_t)                  # (M_T, D)
        h = _dense(h, w_ref, b_ref, W_TP1, "tanh")
        h = _dense(h, w_ref, b_ref, W_TP2)

        # ---------------- SSA: spatial attention per (head, time step) -------
        key = _dense(h, w_ref, b_ref, W_SKEY)
        val = _dense(h, w_ref, b_ref, W_SVAL)
        y = _mha(h, key, val, mask_s)                  # (M_S, D)
        y = _dense(y, w_ref, b_ref, W_SP1, "relu")
        y = _dense(y, w_ref, b_ref, W_SP2)

        # ---------------- gated aggregator: sum over proxy axis --------------
        gate = _dense(_dense(y, w_ref, b_ref, W_AG1, "relu"),
                      w_ref, b_ref, W_AG2, "sigmoid")
        gy = gate * y                                   # (NO_PROXIES*N, D)
        out = gy[:N, :]
        for p in range(1, NO_PROXIES):
            out = out + gy[p * N:(p + 1) * N, :]

        o_ref[0, i] = out.astype(o_ref.dtype)


def _build_masks():
    n = NUM_NODES
    rq = np.arange(M_T)
    rk = np.arange(L_T)
    same_node = (rq[:, None] % n) == (rk[None, :] % n)
    mask_t = np.where(same_node, 0.0, NEG_INF).astype(np.float32)
    rs = np.arange(M_S)
    same_time = (rs[:, None] // n) == (rs[None, :] // n)
    mask_s = np.where(same_time, 0.0, NEG_INF).astype(np.float32)
    return jnp.asarray(mask_t), jnp.asarray(mask_s)


def shtblock_forward(x, z_data, params):
    del z_data  # only used when dynamic=True
    B = x.shape[0]
    N, D = NUM_NODES, INPUT_DIM

    weights = jnp.stack([params[k] for k in _W_ORDER]).astype(MATMUL_DTYPE)
    biases = jnp.stack([params[k] for k in _B_ORDER]).reshape(NUM_LIN, 1, D)
    mask_t, mask_s = _build_masks()

    return pl.pallas_call(
        _shtblock_kernel,
        out_shape=jax.ShapeDtypeStruct((B, CUTS, N, D), x.dtype),
        grid=(B,),
        in_specs=[
            pl.BlockSpec((1, T_TOTAL, N, D), lambda b: (b, 0, 0, 0)),
            pl.BlockSpec((1, CUTS * NO_PROXIES, N, D), lambda b: (0, 0, 0, 0)),
            pl.BlockSpec((M_T, L_T), lambda b: (0, 0)),
            pl.BlockSpec((M_S, M_S), lambda b: (0, 0)),
            pl.BlockSpec((NUM_LIN, D, D), lambda b: (0, 0, 0)),
            pl.BlockSpec((NUM_LIN, 1, D), lambda b: (0, 0, 0)),
        ],
        out_specs=pl.BlockSpec((1, CUTS, N, D), lambda b: (b, 0, 0, 0)),
        scratch_shapes=[pltpu.VMEM((L_T, D), jnp.float32)],
        compiler_params=pltpu.CompilerParams(
            dimension_semantics=("parallel",)),   # v7x: batch across the 2 TCs
    )(x, params["proxies"], mask_t, mask_s, weights, biases)


# --------------- standalone LinearNDimension (the spec module) ---------------
def _linear_nd_kernel(x_ref, w_ref, b_ref, o_ref):
    y = jnp.dot(x_ref[...], w_ref[...], preferred_element_type=jnp.float32)
    o_ref[...] = (y + b_ref[...]).astype(o_ref.dtype)


def linear_nd(x, weights, biases):
    """LinearNDimension.forward for static 2-D weights: matmul(x, W) + b.
    TODO(synk): >3-dim per-node weight branch (dynamic=True) not implemented.
    """
    shp = x.shape
    d_out = weights.shape[-1]
    y = pl.pallas_call(
        _linear_nd_kernel,
        out_shape=jax.ShapeDtypeStruct((int(np.prod(shp[:-1])), d_out), x.dtype),
        in_specs=[pl.BlockSpec(memory_space=pltpu.MemorySpace.VMEM)] * 3,
        out_specs=pl.BlockSpec(memory_space=pltpu.MemorySpace.VMEM),
    )(x.reshape(-1, shp[-1]), weights, biases.reshape(1, d_out))
    return y.reshape(shp[:-1] + (d_out,))


# ------------------------------ parameters -----------------------------------
def init_params(key):
    D = INPUT_DIM
    ks = iter(jax.random.split(key, 32))
    p = {}
    p["proxies"] = jax.random.normal(
        next(ks), (1, CUTS * NO_PROXIES, NUM_NODES, D), jnp.float32)
    # static ParameterGenerators (dynamic=False)
    for name in ("tpg0", "tpg1", "spg0", "spg1"):
        p[f"{name}_w"] = jax.random.uniform(next(ks), (D, D), jnp.float32) * 0.1
        p[f"{name}_b"] = jax.random.uniform(next(ks), (D,), jnp.float32) * 0.1
    # nn.Linear projections (stored as (in, out); y = x @ W + b)
    for name in ("t_proj1", "t_proj2", "s_proj1", "s_proj2", "agg1", "agg2"):
        p[f"{name}_w"] = (jax.random.normal(next(ks), (D, D), jnp.float32)
                          / math.sqrt(D))
        p[f"{name}_b"] = jax.random.normal(next(ks), (D,), jnp.float32) * 0.01
    return p


# --------------------------------- main ---------------------------------------
if __name__ == "__main__":
    key = jax.random.PRNGKey(0)
    kx, kz, kp = jax.random.split(key, 3)

    x = jax.random.normal(kx, (BATCH, T_TOTAL, NUM_NODES, INPUT_DIM), jnp.float32)
    z_data = jnp.zeros((BATCH, NUM_NODES, MEMORY_SIZE), jnp.float32)  # unused (dynamic=False)
    params = init_params(kp)

    # exercise the standalone LinearNDimension kernel (spec module, static path)
    y_lin = jax.block_until_ready(linear_nd(x, params["tpg0_w"], params["tpg0_b"]))
    assert y_lin.shape == x.shape

    fwd = jax.jit(shtblock_forward)
    out = jax.block_until_ready(fwd(x, z_data, params))

    assert out.shape == (BATCH, CUTS, NUM_NODES, INPUT_DIM), out.shape
    assert bool(jnp.all(jnp.isfinite(out)))
    print("KERNEL_OK")
</pallas_src>

<mosaic_0001>
module attributes {stable_mosaic.version = 11 : i64} {
  func.func @_linear_nd_kernel(%arg0: memref<48x32xf32, #tpu.memory_space<vmem>>, %arg1: memref<32x32xf32, #tpu.memory_space<vmem>>, %arg2: memref<1x32xf32, #tpu.memory_space<vmem>>, %arg3: memref<48x32xf32, #tpu.memory_space<vmem>>) attributes {dimension_semantics = [], scalar_prefetch = 0 : i64, scratch_operands = 0 : i64, tpu.core_type = #tpu.core_type<tc>} {
    %c0 = arith.constant 0 : index
    %c0_0 = arith.constant 0 : index
    %0 = vector.load %arg0[%c0, %c0_0] : memref<48x32xf32, #tpu.memory_space<vmem>>, vector<48x32xf32>
    %c0_1 = arith.constant 0 : index
    %c0_2 = arith.constant 0 : index
    %1 = vector.load %arg1[%c0_1, %c0_2] : memref<32x32xf32, #tpu.memory_space<vmem>>, vector<32x32xf32>
    %cst = arith.constant dense<0.000000e+00> : vector<48x32xf32>
    %2 = tpu.matmul %0, %1, %cst {dimension_numbers = #tpu.dot_dimension_numbers<[1], [0], [0], [1], [0, 0, 1, 1], [], []>} : vector<48x32xf32>, vector<32x32xf32>, vector<48x32xf32> -> vector<48x32xf32>
    %c0_3 = arith.constant 0 : index
    %c0_4 = arith.constant 0 : index
    %3 = vector.load %arg2[%c0_3, %c0_4] : memref<1x32xf32, #tpu.memory_space<vmem>>, vector<1x32xf32>
    %4 = vector.broadcast %3 : vector<1x32xf32> to vector<48x32xf32>
    %5 = arith.addf %2, %4 : vector<48x32xf32>
    %c0_5 = arith.constant 0 : index
    %c0_6 = arith.constant 0 : index
    %6 = vector.load %arg3[%c0_5, %c0_6] : memref<48x32xf32, #tpu.memory_space<vmem>>, vector<48x32xf32>
    tpu.vector_store %arg3[%c0_5, %c0_6], %5 {strides = array<i32>} : memref<48x32xf32, #tpu.memory_space<vmem>>, vector<48x32xf32>,
    return
  }
}

</mosaic_0001>

<bundles_post_ra>
// kernel: tpu_custom_call.1
= control target key start
LH: loop header
LB: loop body
LE: loop exit
PB: predicated region body
PF: predicated region fallthrough
CT: control target
= control target key end

     0   :  { %vm28_vm0 = vcmask 261120   ;;  %s194_s1 = inlined_call_operand.vmem [shape: f32[32,32], index: 1, kind: input, shape index: {}]   ;;  %s195_s0 = inlined_call_operand.vmem [shape: f32[48,32], index: 0, kind: input, shape index: {}]   ;;  %s196_s2 = inlined_call_operand.vmem [shape: f32[1,32], index: 2, kind: input, shape index: {}]   ;;  %s197_s3 = inlined_call_operand.vmem [shape: f32[48,32], index: 3, kind: output, shape index: {}]  }
   0x1   :  { %v23_v0 = vld [vmem:[%s194_s1 + $0x18] sm:$0xff]  ;;  %v22_v1 = vld [vmem:[%s194_s1 + $0x10] sm:$0xff]  ;;  %v21_v2 = vld [vmem:[%s194_s1 + $0x8] sm:$0xff] }
   0x2   :  { %100 = vmatpush.msra.mxu3 %v23_v0  ;;  %98 = vmatpush.msra.mxu1 %v23_v0  ;;  %v20_v3 = vld [vmem:[%s194_s1] sm:$0xff]  ;;  %v15_v5 = vld [vmem:[%s195_s0 + $0x8] sm:$0xff]  ;;  %v17_v6 = vld [vmem:[%s195_s0 + $0x18] sm:$0xff] }
   0x3   :  { %99 = vmatpush.msra.mxu2 %v23_v0  ;;  %59 = vmatpush.msra.mxu0 %v23_v0  ;;  %v18_v4 = vld [vmem:[%s195_s0 + $0x20] sm:$0xff]  ;;  %v19_v8 = vld [vmem:[%s195_s0 + $0x28] sm:$0xff]  ;;  %v16_v9 = vld [vmem:[%s195_s0 + $0x10] sm:$0xff] }
   0x4   :  { %103 = vmatpush.msra.mxu3 %v22_v1  ;;  %101 = vmatpush.msra.mxu1 %v22_v1  ;;  %v14_v7 = vld [vmem:[%s195_s0] sm:$0xff] }
   0x5   :  { %102 = vmatpush.msra.mxu2 %v22_v1  ;;  %60 = vmatpush.msra.mxu0 %v22_v1  ;;  %v110_v10 = vld [vmem:[%s196_s2] ss:$0 sm:$0xff] }
   0x6   :  { %106 = vmatpush.msra.mxu3 %v21_v2  ;;  %104 = vmatpush.msra.mxu1 %v21_v2 }
   0x7   :  { %105 = vmatpush.msra.mxu2 %v21_v2  ;;  %61 = vmatpush.msra.mxu0 %v21_v2 }
   0x8   :  { %109 = vmatpush.msra.mxu3 %v20_v3  ;;  %107 = vmatpush.msra.mxu1 %v20_v3 }
   0x9   :  { %96 = vmatmul.msk.f32.vlgmr.msra.gmra.mxu3 %vm28_vm0, %v18_v4  ;;  %93 = vmatmul.msk.f32.vlgmr.msra.gmra.mxu1 %vm28_vm0, %v15_v5 }
   0xa   :  { %108 = vmatpush.msra.mxu2 %v20_v3  ;;  %62 = vmatpush.msra.mxu0 %v20_v3 }
   0xb   :  { %95 = vmatmul.msk.f32.vlgmr.msra.gmra.mxu2 %vm28_vm0, %v17_v6  ;;  %92 = vmatmul.msk.f32.vlgmr.msra.gmra.mxu0 %vm28_vm0, %v14_v7 }
  0x11   :  { %97 = vmatmul.msk.f32.gmra.mxu3 %vm28_vm0, %v19_v8  ;;  %94 = vmatmul.msk.f32.gmra.mxu1 %vm28_vm0, %v16_v9 }
  0x86   :  { %v67_v11 = vpop.f32.mrf.mxu1 }
  0x87   :  { %v68_v12 = vadd.f32 %v110_v10, %v67_v11 }
  0x88   :  { %v64_v13 = vpop.f32.mrf.mxu0 }
  0x89   :  { %83 = vst.msk [vmem:[%s197_s3 + $0x8] sm:$0xff] %vm28_vm0, %v68_v12  ;;  %v65_v14 = vadd.f32 %v110_v10, %v64_v13 }
  0x8b   :  { %82 = vst.msk [vmem:[%s197_s3] sm:$0xff] %vm28_vm0, %v65_v14 }
  0x8c   :  { %v76_v15 = vpop.f32.mrf.mxu3 }
  0x8d   :  { %v77_v16 = vadd.f32 %v110_v10, %v76_v15 }
  0x8e   :  { %v70_v17 = vpop.f32.mrf.mxu1  ;;  %v73_v18 = vpop.f32.mrf.mxu2 }
  0x8f   :  { %86 = vst.msk [vmem:[%s197_s3 + $0x20] sm:$0xff] %vm28_vm0, %v77_v16  ;;  %v71_v19 = vadd.f32 %v110_v10, %v70_v17  ;;  %v74_v20 = vadd.f32 %v110_v10, %v73_v18 }
  0x91   :  { %84 = vst.msk [vmem:[%s197_s3 + $0x10] sm:$0xff] %vm28_vm0, %v71_v19 }
  0x92   :  { %85 = vst.msk [vmem:[%s197_s3 + $0x18] sm:$0xff] %vm28_vm0, %v74_v20 }
  0x94   :  { %v79_v21 = vpop.f32.mrf.mxu3 }
  0x95   :  { %v80_v22 = vadd.f32 %v110_v10, %v79_v21 }
  0x97   :  { %87 = vst.msk [vmem:[%s197_s3 + $0x28] sm:$0xff] %vm28_vm0, %v80_v22 }

</bundles_post_ra>
